<compile_context>
chip_gen: v6e
topology: v6e:2x2x1
jax: 0.10.0
libtpu: 0.0.40
codegen_flags: <defaults>
</compile_context>

<pallas_src>
import functools

import jax
import jax.numpy as jnp
from jax.experimental import pallas as pl
from jax.experimental.pallas import tpu as pltpu

_LANE = 128
_SUBLANE = 8
_VMEM_LIMIT_BYTES = 48 * 1024 * 1024   # fits v7x (64 MiB physical) and v5e/v6e (128 MiB)


def _round_up(x, m):
    return ((x + m - 1) // m) * m


def _full_spec(shape):
    """Whole-array-resident BlockSpec (constant block index across the row grid)."""
    nd = len(shape)
    return pl.BlockSpec(shape, lambda i, _nd=nd: (0,) * _nd)


# -------------------------- kernels -----------------------------------------
def _xw_kernel(x_ref, w_ref, o_ref):
    # Row-tiled plain matmul: o = X_slab @ W1   (only used when F > H).
    o_ref[...] = jnp.dot(x_ref[...], w_ref[...], preferred_element_type=jnp.float32)


def _layer1_postmul_kernel(a_ref, x_ref, w1_ref, b1_ref, w2p_ref, o_ref):
    # F <= H path: h = relu((Â_slab @ X) @ W1 + b1); o = h @ W2_pad   [tm, 128]
    ax = jnp.dot(a_ref[...], x_ref[...], preferred_element_type=jnp.float32)
    h = jnp.maximum(
        jnp.dot(ax, w1_ref[...], preferred_element_type=jnp.float32) + b1_ref[...], 0.0)
    o_ref[...] = jnp.dot(h, w2p_ref[...], preferred_element_type=jnp.float32)


def _layer1_premul_kernel(a_ref, xw_ref, b1_ref, w2p_ref, o_ref):
    # F > H path: h = relu(Â_slab @ (X W1) + b1); o = h @ W2_pad   [tm, 128]
    h = jnp.maximum(
        jnp.dot(a_ref[...], xw_ref[...], preferred_element_type=jnp.float32) + b1_ref[...],
        0.0)
    o_ref[...] = jnp.dot(h, w2p_ref[...], preferred_element_type=jnp.float32)


def _layer2_kernel(a_ref, hw_ref, b2p_ref, o_ref, *, num_classes):
    # z = Â_slab @ (h W2) + b2 ; o = log_softmax(z) over the first num_classes lanes.
    z = jnp.dot(a_ref[...], hw_ref[...], preferred_element_type=jnp.float32) + b2p_ref[...]
    col = jax.lax.broadcasted_iota(jnp.int32, z.shape, 1)
    valid = col < num_classes
    zmax = jnp.max(jnp.where(valid, z, -1e30), axis=1, keepdims=True)
    zs = z - zmax
    lse = jnp.log(jnp.sum(jnp.where(valid, jnp.exp(zs), 0.0), axis=1, keepdims=True))
    o_ref[...] = zs - lse   # lanes >= num_classes hold junk; sliced off in the wrapper


# -------------------------- wrapper ------------------------------------------
def gcn_forward(a_hat, x, w1, b1, w2, b2, *, max_row_tile=None):
    n, f = x.shape
    hid = w1.shape[1]
    c = w2.shape[1]
    cp = _round_up(c, _LANE)                 # lane-dense class dim (pad C -> 128)

    # --- pick the row tile tm from the VMEM budget ---------------------------
    n8 = _round_up(n, _SUBLANE)
    # conservative resident-operand estimate (x2 to allow for double-buffered blocks)
    resident_bytes = 2 * 4 * (n8 * max(f, hid, cp)   # largest resident matrix (X / XW1 / hW2)
                              + f * hid + hid * cp   # W1, padded W2
                              + hid + cp)            # biases
    slab_budget = max(_VMEM_LIMIT_BYTES - resident_bytes - (4 << 20), 2 << 20)
    bytes_per_row = 4 * 2 * (n8 + cp)        # double-buffered Â-row slab + output-row slab
    tm = slab_budget // bytes_per_row
    tm = min(tm, 512, n8)
    if max_row_tile is not None:
        tm = min(tm, max_row_tile)
    tm = max(_SUBLANE, (tm // _SUBLANE) * _SUBLANE)
    n_pad = _round_up(n, tm)
    # NOTE: X / hW2 are kept fully VMEM-resident; for graphs where N*max(F,H,128)*4B
    # approaches the VMEM limit those would also need to be streamed.

    # --- zero-pad once in the wrapper (padding is sliced off at the end) -----
    a_p = jnp.zeros((n_pad, n_pad), jnp.float32).at[:n, :n].set(a_hat)
    x_p = jnp.zeros((n_pad, f), jnp.float32).at[:n, :].set(x)
    w2_p = jnp.zeros((hid, cp), jnp.float32).at[:, :c].set(w2)
    b2_p = jnp.zeros((1, cp), jnp.float32).at[:, :c].set(b2)
    b1_2d = jnp.asarray(b1, jnp.float32).reshape(1, hid)

    grid = (n_pad // tm,)
    a_spec = pl.BlockSpec((tm, n_pad), lambda i: (i, 0))
    out_spec = pl.BlockSpec((tm, cp), lambda i: (i, 0))
    cparams = pltpu.CompilerParams(
        dimension_semantics=("parallel",),   # independent row blocks -> v7x megacore
        vmem_limit_bytes=_VMEM_LIMIT_BYTES,
    )

    # ---- pass 1: stream Â row slabs -> hW2 = relu(GCNConv1(x)) @ W2  [n_pad, cp]
    if f <= hid:
        hw2 = pl.pallas_call(
            _layer1_postmul_kernel,
            out_shape=jax.ShapeDtypeStruct((n_pad, cp), jnp.float32),
            grid=grid,
            in_specs=[a_spec, _full_spec((n_pad, f)), _full_spec((f, hid)),
                      _full_spec((1, hid)), _full_spec((hid, cp))],
            out_specs=out_spec,
            compiler_params=cparams,
        )(a_p, x_p, w1, b1_2d, w2_p)
    else:
        # F > H: cheaper to contract Â against the narrower XW1; compute it once.
        xw1 = pl.pallas_call(
            _xw_kernel,
            out_shape=jax.ShapeDtypeStruct((n_pad, hid), jnp.float32),
            grid=grid,
            in_specs=[pl.BlockSpec((tm, f), lambda i: (i, 0)), _full_spec((f, hid))],
            out_specs=pl.BlockSpec((tm, hid), lambda i: (i, 0)),
            compiler_params=cparams,
        )(x_p, w1)
        hw2 = pl.pallas_call(
            _layer1_premul_kernel,
            out_shape=jax.ShapeDtypeStruct((n_pad, cp), jnp.float32),
            grid=grid,
            in_specs=[a_spec, _full_spec((n_pad, hid)), _full_spec((1, hid)),
                      _full_spec((hid, cp))],
            out_specs=out_spec,
            compiler_params=cparams,
        )(a_p, xw1, b1_2d, w2_p)

    # ---- pass 2: stream Â row slabs -> out = log_softmax(Â @ hW2 + b2) ------
    out_p = pl.pallas_call(
        functools.partial(_layer2_kernel, num_classes=c),
        out_shape=jax.ShapeDtypeStruct((n_pad, cp), jnp.float32),
        grid=grid,
        in_specs=[a_spec, _full_spec((n_pad, cp)), _full_spec((1, cp))],
        out_specs=out_spec,
        compiler_params=cparams,
    )(a_p, hw2, b2_p)

    return out_p[:n, :c]


def build_normalized_adjacency(edge_index, num_nodes):
    """Dense Â = D^{-1/2}(A + I)D^{-1/2}; A[dst, src] = 1 (messages src -> dst)."""
    src, dst = edge_index[0], edge_index[1]
    a = jnp.zeros((num_nodes, num_nodes), jnp.float32)
    a = a.at[dst, src].set(1.0)
    a = a + jnp.eye(num_nodes, dtype=jnp.float32)          # add self-loops
    deg = jnp.sum(a, axis=1)                                # in-degree incl. self-loop
    dinv = jnp.where(deg > 0, 1.0 / jnp.sqrt(deg), 0.0)
    return dinv[:, None] * a * dinv[None, :]


if __name__ == "__main__":
    key = jax.random.PRNGKey(0)
    k_x, k_e, k_w1, k_w2 = jax.random.split(key, 4)

    # small synthetic graph consistent with the module's forward
    num_nodes = 48
    num_features = 8
    hidden = 32
    num_classes = 4
    num_edges = 160

    x = jax.random.normal(k_x, (num_nodes, num_features), dtype=jnp.float32)
    edge_index = jax.random.randint(k_e, (2, num_edges), 0, num_nodes, dtype=jnp.int32)
    a_hat = build_normalized_adjacency(edge_index, num_nodes)

    # deterministic parameter init (glorot-style scaling), biases zero (PyG default)
    s1 = (6.0 / (num_features + hidden)) ** 0.5
    s2 = (6.0 / (hidden + num_classes)) ** 0.5
    w1 = jax.random.uniform(k_w1, (num_features, hidden), jnp.float32, -s1, s1)
    w2 = jax.random.uniform(k_w2, (hidden, num_classes), jnp.float32, -s2, s2)
    b1 = jnp.zeros((1, hidden), jnp.float32)
    b2 = jnp.zeros((1, num_classes), jnp.float32)

    # max_row_tile=16 -> row grid of 3 blocks, exercising the streaming pipeline
    out = gcn_forward(a_hat, x, w1, b1, w2, b2, max_row_tile=16)
    jax.block_until_ready(out)

    # sanity check against plain-JAX reference (original association order)
    h_ref = jnp.maximum(a_hat @ (x @ w1) + b1, 0.0)
    z_ref = a_hat @ (h_ref @ w2) + b2
    ref = jax.nn.log_softmax(z_ref, axis=1)
    assert out.shape == ref.shape
    assert jnp.allclose(out, ref, atol=1e-4, rtol=1e-4), float(jnp.max(jnp.abs(out - ref)))

    print("KERNEL_OK")
</pallas_src>

<mosaic_0001>
module attributes {stable_mosaic.version = 11 : i64} {
  func.func @_layer1_postmul_kernel(%arg0: i32, %arg1: memref<16x48xf32, #tpu.memory_space<vmem>>, %arg2: memref<48x8xf32, #tpu.memory_space<vmem>>, %arg3: memref<8x32xf32, #tpu.memory_space<vmem>>, %arg4: memref<1x32xf32, #tpu.memory_space<vmem>>, %arg5: memref<32x128xf32, #tpu.memory_space<vmem>>, %arg6: memref<16x128xf32, #tpu.memory_space<vmem>>) attributes {dimension_semantics = [#tpu.dimension_semantics<parallel>], iteration_bounds = array<i64: 3>, scalar_prefetch = 0 : i64, scratch_operands = 0 : i64, tpu.core_type = #tpu.core_type<tc>, window_params = [{transform_indices = @transform_0, window_bounds = array<i64: 16, 48>}, {pipeline_mode = #tpu.pipeline_mode<synchronous>, transform_indices = @transform_1, window_bounds = array<i64: 48, 8>}, {pipeline_mode = #tpu.pipeline_mode<synchronous>, transform_indices = @transform_2, window_bounds = array<i64: 8, 32>}, {pipeline_mode = #tpu.pipeline_mode<synchronous>, transform_indices = @transform_3, window_bounds = array<i64: 1, 32>}, {pipeline_mode = #tpu.pipeline_mode<synchronous>, transform_indices = @transform_4, window_bounds = array<i64: 32, 128>}, {transform_indices = @transform_5, window_bounds = array<i64: 16, 128>}]} {
    %c0 = arith.constant 0 : index
    %c0_0 = arith.constant 0 : index
    %0 = vector.load %arg1[%c0, %c0_0] : memref<16x48xf32, #tpu.memory_space<vmem>>, vector<16x48xf32>
    %c0_1 = arith.constant 0 : index
    %c0_2 = arith.constant 0 : index
    %1 = vector.load %arg2[%c0_1, %c0_2] : memref<48x8xf32, #tpu.memory_space<vmem>>, vector<48x8xf32>
    %cst = arith.constant dense<0.000000e+00> : vector<16x8xf32>
    %2 = tpu.matmul %0, %1, %cst {dimension_numbers = #tpu.dot_dimension_numbers<[1], [0], [0], [1], [0, 0, 1, 1], [], []>} : vector<16x48xf32>, vector<48x8xf32>, vector<16x8xf32> -> vector<16x8xf32>
    %c0_3 = arith.constant 0 : index
    %c0_4 = arith.constant 0 : index
    %3 = vector.load %arg3[%c0_3, %c0_4] : memref<8x32xf32, #tpu.memory_space<vmem>>, vector<8x32xf32>
    %cst_5 = arith.constant dense<0.000000e+00> : vector<16x32xf32>
    %4 = tpu.matmul %2, %3, %cst_5 {dimension_numbers = #tpu.dot_dimension_numbers<[1], [0], [0], [1], [0, 0, 1, 1], [], []>} : vector<16x8xf32>, vector<8x32xf32>, vector<16x32xf32> -> vector<16x32xf32>
    %c0_6 = arith.constant 0 : index
    %c0_7 = arith.constant 0 : index
    %5 = vector.load %arg4[%c0_6, %c0_7] : memref<1x32xf32, #tpu.memory_space<vmem>>, vector<1x32xf32>
    %6 = vector.broadcast %5 : vector<1x32xf32> to vector<16x32xf32>
    %7 = arith.addf %4, %6 : vector<16x32xf32>
    %cst_8 = arith.constant 0.000000e+00 : f32
    %8 = vector.broadcast %cst_8 : f32 to vector<16x32xf32>
    %9 = arith.maximumf %7, %8 : vector<16x32xf32>
    %c0_9 = arith.constant 0 : index
    %c0_10 = arith.constant 0 : index
    %10 = vector.load %arg5[%c0_9, %c0_10] : memref<32x128xf32, #tpu.memory_space<vmem>>, vector<32x128xf32>
    %cst_11 = arith.constant dense<0.000000e+00> : vector<16x128xf32>
    %11 = tpu.matmul %9, %10, %cst_11 {dimension_numbers = #tpu.dot_dimension_numbers<[1], [0], [0], [1], [0, 0, 1, 1], [], []>} : vector<16x32xf32>, vector<32x128xf32>, vector<16x128xf32> -> vector<16x128xf32>
    %c0_12 = arith.constant 0 : index
    %c0_13 = arith.constant 0 : index
    %12 = vector.load %arg6[%c0_12, %c0_13] : memref<16x128xf32, #tpu.memory_space<vmem>>, vector<16x128xf32>
    tpu.vector_store %arg6[%c0_12, %c0_13], %11 {strides = array<i32>} : memref<16x128xf32, #tpu.memory_space<vmem>>, vector<16x128xf32>,
    return
  }
  func.func @transform_0(%arg0: i32) -> (i32, i32) {
    %c0_i32 = arith.constant 0 : i32
    %c0_i32_0 = arith.constant 0 : i32
    return %arg0, %c0_i32 : i32, i32
  }
  func.func @transform_1(%arg0: i32) -> (i32, i32) {
    %c0_i32 = arith.constant 0 : i32
    %c0_i32_0 = arith.constant 0 : i32
    %c0_i32_1 = arith.constant 0 : i32
    return %c0_i32, %c0_i32_0 : i32, i32
  }
  func.func @transform_2(%arg0: i32) -> (i32, i32) {
    %c0_i32 = arith.constant 0 : i32
    %c0_i32_0 = arith.constant 0 : i32
    %c0_i32_1 = arith.constant 0 : i32
    return %c0_i32, %c0_i32_0 : i32, i32
  }
  func.func @transform_3(%arg0: i32) -> (i32, i32) {
    %c0_i32 = arith.constant 0 : i32
    %c0_i32_0 = arith.constant 0 : i32
    %c0_i32_1 = arith.constant 0 : i32
    return %c0_i32, %c0_i32_0 : i32, i32
  }
  func.func @transform_4(%arg0: i32) -> (i32, i32) {
    %c0_i32 = arith.constant 0 : i32
    %c0_i32_0 = arith.constant 0 : i32
    %c0_i32_1 = arith.constant 0 : i32
    return %c0_i32, %c0_i32_0 : i32, i32
  }
  func.func @transform_5(%arg0: i32) -> (i32, i32) {
    %c0_i32 = arith.constant 0 : i32
    %c0_i32_0 = arith.constant 0 : i32
    return %arg0, %c0_i32 : i32, i32
  }
}

</mosaic_0001>

<bundles_post_ra>
// kernel: tpu_custom_call.1
= control target key start
LH: loop header
LB: loop body
LE: loop exit
PB: predicated region body
PF: predicated region fallthrough
CT: control target
= control target key end

     0   :  { %10 = vsyncpa [#allocation3], 0  ;;  %s996_s0 = inlined_call_operand.vmem [shape: f32[48,48], index: 0, kind: input, shape index: {}]   ;;  %s997_s1 = inlined_call_operand.vmem [shape: f32[48,8], index: 1, kind: input, shape index: {}]   ;;  %s998_s2 = inlined_call_operand.vmem [shape: f32[8,32], index: 2, kind: input, shape index: {}]   ;;  %s999_s3 = inlined_call_operand.vmem [shape: f32[1,32], index: 3, kind: input, shape index: {}]   ;;  %s1000_s4 = inlined_call_operand.hbm [shape: f32[32,128], index: 4, kind: input, shape index: {}]   ;;  %s1001_s5 = inlined_call_operand.hbm [shape: f32[48,128], index: 5, kind: output, shape index: {}]  }
   0x1   :  { %11 = vsyncpa [#allocation4], 0 }
   0x2   :  { %13 = vsyncpa [#allocation4 + $0x1], 0  ;;  %s851_s18 = smov 0   ;;  %s853_s19 = smov 0  }
   0x3   :  { %s855_s20 = smov 0   ;;  %s857_s21 = smov 0  }
   0x4 LB: > { %s872_s22 = sadd.s32 4294967295, %s813_s21   ;;  %s599_s23 = sadd.s32 4294967294, %s813_s21   ;;  %s813_s21 = sphi %s857_s21, %s1009_s21   ;;  %s809_s20 = sphi %s855_s20, %s1008_s20   ;;  %s805_s19 = sphi %s853_s19, %s1007_s19   ;;  %s801_s18 = sphi %s851_s18, %s1006_s18  }
   0x5   : > { %s876_s24 = sadd.s32 1, %s813_s21   ;;  %s136_s25 = sadd.s32 1, %s809_s20 }
   0x6   : > { %s133_s26 = ssub.s32 %s813_s21, %s876_s24  ;;  %p146_p0 = scmp.ne.s32.totalorder %s809_s20, %s805_s19 }
   0x7   : > { %p134_p1 = scmp.eq.s32.totalorder %s133_s26, 0  ;;  %p147_p2 = scmp.eq.s32.totalorder %s872_s22, 2 }
   0x8   : > { %p152_p3 = scmp.ne.s32.totalorder %s805_s19, %s801_s18  ;;  %p153_p4 = scmp.eq.s32.totalorder %s599_s23, 2 }
   0x9   : > { %s887_s27 = scalar_select %p134_p1, %s809_s20, %s136_s25  }
   0xa   : > { %p889_p5 = por %p147_p2, %p146_p0  ;;  %p893_p6 = por %p153_p4, %p152_p3 }
   0xb   : > { %p600_p7 = scmp.ge.s32.totalorder %s813_s21, 1  ;;  %p160_p8 = scmp.lt.s32.totalorder %s813_s21, 4 }
   0xc   : > { %s1003_s29 = scalar_select %p893_p6, 1, 0 }
   0xd   : > { %p683_p9 = scmp.eq.s32.totalorder %s872_s22, 0  ;;  %p900_p10 = pnand %p600_p7, %p160_p8 }
   0xe   : > { %s815_s6 = smov [#allocation2]  }
   0xf   : > { %s181_s7 = sshll.u32 %s815_s6, 4  ;;  %p675_p11 = pneg %p900_p10  ;;  %s182_s7 = int_to_ptr.vmem [resolvable:$true] %s181_s7 }
  0x10   : > { %s734_s8 = scalar_lea.vmem %s182_s7, 512  ;;  %p742_p3 = scmp.lt.s32.totalorder %s182_s7, %s182_s7 }
  0x11   : > { %p676_p12 = pnand %p683_p9, %p675_p11  ;;  %p735_p0 = scmp.ne.s32.totalorder %s182_s7, %s734_s8 }
  0x12   : > { %p743_p4 = scmp.lt.s32.totalorder %s734_s8, %s734_s8 }
  0x13   : > { %p725_p13 = pneg %p676_p12 }
  0x14   : > { %p744_p6 = por %p743_p4, %p742_p3 }
  0x15   : > { %p737_p1 = pnand %p735_p0, %p725_p13 }
  0x17   : > { %p738_p2 = pneg %p737_p1 }
  0x19   : > { %p745_p7 = pnand %p744_p6, %p738_p2 }
  0x1b   : > { %748 = shalt.err (!%p745_p7)
}
  0x1c   : > { %s816_s9 = smov 128   ;;  %s817_s10 = smov 8  }
  0x1d   : > { %678 = dma.hbm_to_vmem [thread:$0]  (!%p676_p12), %s1000_s4, 512, %s182_s7, [#allocation3], %s816_s9, %s816_s9, %s817_s10  }
  0x1e   : > { %206 = sbr.rel (%p900_p10) target bundleno = 654 (0x28e), region = 40 }
  0x23   : > { %792 = dma.done.wait (%p683_p9), [#allocation3], 512  }
  0x24   : > { %794 = vsyncadd (%p683_p9), [#allocation3], 4294966784  ;;  %s606_s13 = sshll.u32 %s872_s22, 1  ;;  %v248_v0 = vld [vmem:[%s997_s1 + $0x28] sm:$0xff]  ;;  %v247_v1 = vld [vmem:[%s997_s1 + $0x20] sm:$0xff]  ;;  %vm249_vm0 = vcmask 392192  }
  0x25   : > { %p235_p8 = scmp.lt.s32.totalorder %s606_s13, 5  ;;  %638 = vmatprep.subr.mxu0 %v248_v0  ;;  %v246_v2 = vld [vmem:[%s997_s1 + $0x18] sm:$0xff]  ;;  %v245_v4 = vld [vmem:[%s997_s1 + $0x10] sm:$0xff]  ;;  %v244_v5 = vld [vmem:[%s997_s1 + $0x8] sm:$0xff]  ;;  %vm339_vm1 = vcmask 64512   ;;  %vm427_vm2 = vcmask 261120  }
  0x26   : > { %639 = vmatpush3.msra.mxu0 %v248_v0  ;;  %v243_v6 = vld [vmem:[%s997_s1] sm:$0xff]  ;;  %v426_v11 = vld [vmem:[#allocation2 + $0x18] sm:$0xff]  ;;  %v425_v12 = vld [vmem:[#allocation2 + $0x10] sm:$0xff]  ;;  %s231_s23 = sand.u32 1, %s805_s19   ;;  %s620_s6 = sshll.u32 %s872_s22, 8 }
  0x27   : > { %s1011_s13 = smov (!%p235_p8, %s606_s13), 5  ;;  %640 = vmatprep.subr.mxu0 %v247_v1  ;;  %v331_v8 = vld [vmem:[%s998_s2] sm:$0xff]  ;;  %v424_v13 = vld [vmem:[#allocation2 + $0x8] sm:$0xff]  ;;  %s605_s25 = sshll.u32 %s231_s23, 4 }
  0x28   : > { %s607_s14 = sshll.u32 %s1011_s13, 3  ;;  %641 = vmatpush3.msra.mxu0 %v247_v1  ;;  %653 = vmatprep.subr.mxu1 %v331_v8  ;;  %v423_v14 = vld [vmem:[#allocation2] sm:$0xff]  ;;  %s233_s26 = scalar_lea.vmem [#allocation5], %s605_s25 }
  0x29   : > { %s238_s17 = scalar_lea.vmem %s996_s0, %s607_s14  ;;  %642 = vmatprep.subr.mxu0 %v246_v2  ;;  %654 = vmatpush3.msra.mxu1 %v331_v8  ;;  %v610_v15 = vld [vmem:[%s999_s3] ss:$0 sm:$0xff]  ;;  %s525_s30 = sshll.u32 %s233_s26, 4  ;;  %s949_s30 = int_to_ptr.vmem [resolvable:$true] %s525_s30 }
  0x2a   : > { %v241_v3 = vld [vmem:[%s238_s17] sm:$0xff]  ;;  %643 = vmatpush3.msra.mxu0 %v246_v2  ;;  %v242_v7 = vld [vmem:[%s238_s17 + $0x8] sm:$0xff]  ;;  %658 = vmatprep.subr.mxu1 %v426_v11  ;;  %s954_s9 = scalar_lea.hbm %s1001_s5, %s620_s6  ;;  %s956_s10 = scalar_lea.sflag [#allocation4], %s231_s23 }
  0x2b   : > { %650 = vmatprep.mubr.msk.f32.mxu0 %vm249_vm0, %v241_v3  ;;  %644 = vmatprep.subr.mxu0 %v245_v4  ;;  %s749_s11 = scalar_lea.vmem %s949_s30, 256  ;;  %s818_s22 = smov [#allocation5]  }
  0x2c   : > { %645 = vmatpush3.msra.mxu0 %v245_v4  ;;  %p750_p6 = scmp.ne.s32.totalorder %s949_s30, %s749_s11  ;;  %s753_s12 = sshll.u32 %s818_s22, 4  ;;  %s754_s12 = int_to_ptr.vmem [resolvable:$false] %s753_s12 }
  0x2d   : > { %646 = vmatprep.subr.mxu0 %v244_v5  ;;  %s755_s13 = scalar_lea.vmem %s754_s12, 512  ;;  %p756_p11 = scmp.lt.s32.totalorder %s949_s30, %s754_s12 }
  0x2e   : > { %647 = vmatpush3.msra.mxu0 %v244_v5  ;;  %p751_p9 = pnand %p750_p6, %p889_p5  ;;  %p757_p12 = scmp.lt.s32.totalorder %s755_s13, %s749_s11 }
  0x2f   : > { %648 = vmatprep.subr.mxu0 %v243_v6 }
  0x30   : > { %649 = vmatpush3.msra.mxu0 %v243_v6  ;;  %p752_p10 = pneg %p751_p9  ;;  %p758_p13 = por %p757_p12, %p756_p11 }
  0x31   : > { %651 = vmatmul.mubr.msk.f32.vlgmr.msra.gmra.mxu0 %vm249_vm0, %v242_v7 }
  0x32   : > { %p759_p0 = pnand %p758_p13, %p752_p10 }
  0xf1   : > { %v652_v9 = vpop.f32.mrf.mxu0 }
  0xf3   : > { %v322_v10 = vpop.f32.mrf.mxu0 }
  0xf4   : > { %655 = vmatprep.mubr.msk.f32.mxu1 %vm339_vm1, %v322_v10 }
  0xf5   : > { %656 = vmatmul.mubr.msk.f32.vlgmr.msra.gmra.mxu1 %vm339_vm1, %v652_v9 }
  0xf6   : > { %659 = vmatpush3.msra.mxu1 %v426_v11 }
  0xf7   : > { %660 = vmatprep.subr.mxu1 %v425_v12 }
  0xf8   : > { %661 = vmatpush3.msra.mxu1 %v425_v12 }
  0xf9   : > { %662 = vmatprep.subr.mxu1 %v424_v13 }
  0xfa   : > { %663 = vmatpush3.msra.mxu1 %v424_v13 }
  0xfb   : > { %664 = vmatprep.subr.mxu1 %v423_v14 }
  0xfc   : > { %665 = vmatpush3.msra.mxu1 %v423_v14 }
 0x1b5   : > { %v657_v16 = vpop.f32.mrf.mxu1 }
 0x1b6   : > { %v418_v17 = vadd.f32 %v657_v16, %v610_v15 }
 0x1b7   : > { %v412_v18 = vpop.f32.mrf.mxu1 }
 0x1b8   : > { %v413_v19 = vadd.f32 %v610_v15, %v412_v18  ;;  %v422_v21 = vmax.f32 %v418_v17, 0.0 }
 0x1ba   : > { %v421_v20 = vmax.f32 %v413_v19, 0.0 }
 0x1bc   : > { %666 = vmatprep.mubr.msk.f32.mxu1 %vm427_vm2, %v421_v20 }
 0x1bd   : > { %667 = vmatmul.mubr.msk.f32.vlgmr.msra.gmra.mxu1 %vm427_vm2, %v422_v21 }
 0x27d   : > { %v668_v22 = vpop.f32.mrf.mxu1 }
 0x27e   : > { %510 = vst [vmem:[%s233_s26 + $0x8] sm:$0xff] %v668_v22 }
 0x27f   : > { %v500_v23 = vpop.f32.mrf.mxu1 }
 0x280   : > { %509 = vst [vmem:[%s233_s26] sm:$0xff] %v500_v23 }
 0x281   : > { %762 = shalt.err (!%p759_p0)
}
 0x282   : > { %s763_s14 = scalar_lea.hbm %s954_s9, 256  ;;  %s767_s17 = scalar_lea.hbm %s1001_s5, 768 }
 0x283   : > { %p764_p1 = scmp.ne.s32.totalorder %s954_s9, %s763_s14  ;;  %p768_p4 = scmp.lt.s32.totalorder %s954_s9, %s1001_s5 }
 0x284   : > { %p769_p7 = scmp.lt.s32.totalorder %s767_s17, %s763_s14 }
 0x285   : > { %p765_p2 = pnand %p764_p1, %p889_p5 }
 0x286   : > { %p770_p8 = por %p769_p7, %p768_p4 }
 0x287   : > { %p766_p3 = pneg %p765_p2 }
 0x289   : > { %p771_p6 = pnand %p770_p8, %p766_p3 }
 0x28b   : > { %774 = shalt.err (!%p771_p6)
}
 0x28c   : > { %s819_s26 = smov 128   ;;  %s820_s6 = smov 8  }
 0x28d   : > { %673 = dma.vmem_to_hbm [thread:$0]  (%p889_p5), %s949_s30, 256, %s954_s9, %s956_s10, %s819_s26, %s819_s26, %s820_s6  }
 0x28e PF: > { %p685_p9 = scmp.ge.s32.totalorder %s813_s21, 2  ;;  %s540_s7 = sand.u32 1, %s801_s18  }
 0x28f   : > { %p1005_p10 = scmp.ne.s32.totalorder %s1003_s29, 0  ;;  %s541_s8 = scalar_lea.sflag [#allocation4], %s540_s7 }
 0x291   : > { %p680_p11 = pnand %p685_p9, %p1005_p10 }
 0x293   : > { %p681_p12 = pneg %p680_p11 }
 0x295   : > { %796 = dma.done.wait (%p681_p12), %s541_s8, 256  }
 0x296   : > { %798 = vsyncadd (%p681_p12), %s541_s8, 4294967040  ;;  %p16_p13 = scmp.ge.s32.totalorder %s876_s24, 5   ;;  %s1006_s18 = smov %s805_s19 }
 0x297   : > { %s1007_s19 = smov %s809_s20  ;;  %s1008_s20 = smov %s887_s27 }
 0x298   : > { %s1009_s21 = smov %s876_s24  ;;  %18 = sbr.rel (!%p16_p13) target bundleno = 4 (0x4), region = 80 }
 0x29d   :  { %546 = vsyncpa [#allocation3], 1 }
 0x29e   :  { %548 = vsyncpa [#allocation3 + $0x1], 1 }
 0x29f   :  { %549 = vsyncpa [#allocation4], 1 }
 0x2a0   :  { %551 = vsyncpa [#allocation4 + $0x1], 1 }

</bundles_post_ra>
